<compile_context>
chip_gen: v7x
topology: tpu7x:2x2x1
jax: 0.10.0
libtpu: 0.0.40
codegen_flags: <defaults>
</compile_context>

<pallas_src>
import jax
import jax.numpy as jnp
from jax import lax
from jax.experimental import pallas as pl
from jax.experimental.pallas import tpu as pltpu


def _ce_per_sample_kernel(logits_ref, targets_ref, ce_ref):
    """Per-row cross entropy for one (TILE_N, C) tile.

    logits_ref:  (TILE_N, C)  caller dtype (bf16 stays bf16)
    targets_ref: (TILE_N, 1)  int32
    ce_ref:      (TILE_N, 1)  float32 per-sample CE
    """
    x = logits_ref[...]                                   # native dtype
    tn, c = x.shape
    tgt = targets_ref[...]                                # (TILE_N, 1) int32

    # --- Sweep 1: row max + target-class select on the same read of x. ------
    # No dynamic gather on TPU -> one-hot compare/select; the compare+select
    # and the max-reduce consume the same vld of each vreg of x.
    class_ids = lax.broadcasted_iota(jnp.int32, (tn, c), 1)
    onehot = class_ids == tgt                              # (TILE_N, C) bool
    m = jnp.max(x, axis=-1, keepdims=True)                 # (TILE_N, 1) native
    # One-hot masked sum is exact in the native dtype (only zeros are added),
    # so the f32 upcast happens on the tiny (TILE_N, 1) result only.
    tgt_logit = jnp.sum(
        jnp.where(onehot, x, jnp.zeros((), x.dtype)), axis=-1, keepdims=True
    ).astype(jnp.float32)

    # --- Sweep 2: exp-accumulate (numerically stable logsumexp). ------------
    # The f32 upcast is fused into this elementwise chain; no separate
    # full-tile f32 temp pass is materialized up front.
    m32 = m.astype(jnp.float32)
    sumexp = jnp.sum(
        jnp.exp(x.astype(jnp.float32) - m32), axis=-1, keepdims=True
    )
    ce_ref[...] = m32 + jnp.log(sumexp) - tgt_logit


def focal_loss(logits, targets, gamma=2.0, weight=None, tile_n=None):
    """logits: (N, C) float (f32 or bf16), targets: (N,) int class indices.

    Returns scalar f32 focal loss, matching the PyTorch module's forward.
    `weight` (optional, shape (C,)) follows CrossEntropyLoss semantics:
    weighted sum of per-sample CE divided by the sum of per-sample weights.
    """
    n, c = logits.shape
    itemsize = jnp.dtype(logits.dtype).itemsize

    # --- pick a row tile -----------------------------------------------------
    # ~4 MiB of logits per buffer (double-buffered by the pipeliner -> ~8 MiB),
    # multiple of 8, never larger than N.  Bigger tiles do not help (HBM
    # roofline saturates ~512 rows) and would only risk VMEM pressure on v7x.
    if tile_n is None:
        budget_rows = max(8, (4 * 1024 * 1024) // max(1, c * itemsize))
        tile_n = min(budget_rows, 8192)
    tile_n = int(tile_n)
    if tile_n >= n:
        tile_n = n                         # single block == full dim (always legal)
    else:
        tile_n = max(8, (tile_n // 8) * 8)

    # Edge block is clipped by Pallas -> no pad copy of the (N, C) logits.
    grid = (pl.cdiv(n, tile_n),)

    targets_i32 = targets.astype(jnp.int32)
    targets_2d = targets_i32.reshape(n, 1)

    cost = pl.CostEstimate(
        flops=6 * n * c,
        transcendentals=n * c,
        bytes_accessed=n * c * itemsize + n * 4 + n * 4,
    )

    ce_per_sample = pl.pallas_call(
        _ce_per_sample_kernel,
        out_shape=jax.ShapeDtypeStruct((n, 1), jnp.float32),
        grid=grid,
        in_specs=[
            pl.BlockSpec((tile_n, c), lambda i: (i, 0)),   # logits tile
            pl.BlockSpec((tile_n, 1), lambda i: (i, 0)),   # targets tile
        ],
        out_specs=pl.BlockSpec((tile_n, 1), lambda i: (i, 0)),
        compiler_params=pltpu.CompilerParams(
            # TODO(synk): on v7x, confirm via profile that both TensorCores get
            # row tiles; if one TC idles, switch this axis to CORE_PARALLEL.
            dimension_semantics=("parallel",),
            vmem_limit_bytes=32 * 1024 * 1024,
        ),
        cost_estimate=cost,
    )(logits, targets_2d)

    # TODO(synk): for small C the (tile_n, 1) output uses masked partial
    # stores; a lane-dense (1, tile_n) transposed output layout would shave the
    # store path, but input HBM traffic dominates for the shapes here.
    # TODO(synk): for very large C (vocab-size logits), add a second grid axis
    # over C with an online logsumexp accumulator instead of one full-C block.

    ce_i = ce_per_sample[:, 0]             # exactly N rows; nothing to slice

    if weight is None:
        ce = jnp.mean(ce_i)
    else:
        # CrossEntropyLoss(weight=w) semantics: weighted sum / sum of weights.
        w = jnp.asarray(weight, jnp.float32)
        w_i = w[targets_i32]
        ce = jnp.sum(w_i * ce_i) / jnp.sum(w_i)

    # Focal transform (scalar math; free in the wrapper).
    pt = jnp.exp(-ce)
    g = float(gamma)
    if g == int(g):
        focal = lax.integer_pow(1.0 - pt, int(g)) * ce
    else:
        focal = (1.0 - pt) ** g * ce
    return focal


def focal_loss_ref(logits, targets, gamma=2.0, weight=None):
    # Pure-JAX reference for validation.
    logp = jax.nn.log_softmax(logits.astype(jnp.float32), axis=-1)
    ce_per = -jnp.take_along_axis(
        logp, targets[:, None].astype(jnp.int32), axis=-1)[:, 0]
    if weight is None:
        ce = jnp.mean(ce_per)
    else:
        w = jnp.asarray(weight, jnp.float32)[targets.astype(jnp.int32)]
        ce = jnp.sum(w * ce_per) / jnp.sum(w)
    pt = jnp.exp(-ce)
    return (1.0 - pt) ** float(gamma) * ce


if __name__ == "__main__":
    key = jax.random.PRNGKey(0)

    # Test 1: small f32 case (single full block).
    N, C = 8, 32
    k1, k2, k3, k4 = jax.random.split(key, 4)
    logits = jax.random.normal(k1, (N, C), dtype=jnp.float32)
    targets = jax.random.randint(k2, (N,), 0, C, dtype=jnp.int32)
    out = jax.block_until_ready(focal_loss(logits, targets, gamma=2.0))
    ref = focal_loss_ref(logits, targets, gamma=2.0)
    assert jnp.allclose(out, ref, rtol=1e-5, atol=1e-5), (out, ref)

    # Test 2: N not a multiple of the tile with a forced small tile -> multi-
    # tile grid with a clipped (partial) edge block, no pad copy anywhere.
    N2, C2 = 21, 128
    logits2 = jax.random.normal(k3, (N2, C2), dtype=jnp.float32)
    targets2 = jax.random.randint(k4, (N2,), 0, C2, dtype=jnp.int32)
    out2 = jax.block_until_ready(focal_loss(logits2, targets2, gamma=2.0, tile_n=8))
    ref2 = focal_loss_ref(logits2, targets2, gamma=2.0)
    assert jnp.allclose(out2, ref2, rtol=1e-5, atol=1e-5), (out2, ref2)

    # Test 3: bf16 logits stay bf16 across the HBM boundary and in the max /
    # select sweep (f32 only inside the exp-accumulate).
    logits_bf16 = logits2.astype(jnp.bfloat16)
    out3 = jax.block_until_ready(focal_loss(logits_bf16, targets2, gamma=2.0))
    ref3 = focal_loss_ref(logits_bf16, targets2, gamma=2.0)
    assert jnp.allclose(out3, ref3, rtol=2e-2, atol=2e-2), (out3, ref3)

    # Test 4: class weights (CrossEntropyLoss(weight=...) semantics).
    w = jax.random.uniform(k1, (C2,), minval=0.5, maxval=1.5, dtype=jnp.float32)
    out4 = jax.block_until_ready(focal_loss(logits2, targets2, gamma=2.0, weight=w))
    ref4 = focal_loss_ref(logits2, targets2, gamma=2.0, weight=w)
    assert jnp.allclose(out4, ref4, rtol=1e-5, atol=1e-5), (out4, ref4)

    print("KERNEL_OK")
</pallas_src>

<mosaic_0001>
module attributes {stable_mosaic.version = 11 : i64} {
  func.func @_ce_per_sample_kernel(%arg0: i32, %arg1: memref<8x32xf32, #tpu.memory_space<vmem>>, %arg2: memref<8x1xi32, #tpu.memory_space<vmem>>, %arg3: memref<8x1xf32, #tpu.memory_space<vmem>>) attributes {dimension_semantics = [#tpu.dimension_semantics<parallel>], iteration_bounds = array<i64: 1>, scalar_prefetch = 0 : i64, scratch_operands = 0 : i64, tpu.core_type = #tpu.core_type<tc>, window_params = [{transform_indices = @transform_0, window_bounds = array<i64: 8, 32>}, {transform_indices = @transform_1, window_bounds = array<i64: 8, 1>}, {transform_indices = @transform_2, window_bounds = array<i64: 8, 1>}]} {
    %c0 = arith.constant 0 : index
    %c0_0 = arith.constant 0 : index
    %0 = vector.load %arg1[%c0, %c0_0] : memref<8x32xf32, #tpu.memory_space<vmem>>, vector<8x32xf32>
    %c0_1 = arith.constant 0 : index
    %c0_2 = arith.constant 0 : index
    %1 = vector.load %arg2[%c0_1, %c0_2] : memref<8x1xi32, #tpu.memory_space<vmem>>, vector<8x1xi32>
    %2 = tpu.iota {dimensions = array<i32: 1>} : vector<8x32xi32>
    %3 = vector.broadcast %1 : vector<8x1xi32> to vector<8x32xi32>
    %4 = arith.cmpi eq, %2, %3 : vector<8x32xi32>
    %cst = arith.constant dense<0xFF800000> : vector<8xf32>
    %5 = vector.multi_reduction <maximumf>, %0, %cst [1] : vector<8x32xf32> to vector<8xf32>
    %6 = vector.shape_cast %5 : vector<8xf32> to vector<8x1xf32>
    %cst_3 = arith.constant 0.000000e+00 : f32
    %7 = vector.broadcast %cst_3 : f32 to vector<8x32xf32>
    %8 = arith.select %4, %0, %7 : vector<8x32xi1>, vector<8x32xf32>
    %cst_4 = arith.constant dense<0.000000e+00> : vector<8xf32>
    %9 = vector.multi_reduction <add>, %8, %cst_4 [1] : vector<8x32xf32> to vector<8xf32>
    %10 = vector.shape_cast %9 : vector<8xf32> to vector<8x1xf32>
    %11 = vector.broadcast %6 : vector<8x1xf32> to vector<8x32xf32>
    %12 = arith.subf %0, %11 : vector<8x32xf32>
    %13 = math.exp %12 : vector<8x32xf32>
    %cst_5 = arith.constant dense<0.000000e+00> : vector<8xf32>
    %14 = vector.multi_reduction <add>, %13, %cst_5 [1] : vector<8x32xf32> to vector<8xf32>
    %15 = vector.shape_cast %14 : vector<8xf32> to vector<8x1xf32>
    %16 = math.log %15 : vector<8x1xf32>
    %17 = arith.addf %6, %16 : vector<8x1xf32>
    %18 = arith.subf %17, %10 : vector<8x1xf32>
    %c0_6 = arith.constant 0 : index
    %c0_7 = arith.constant 0 : index
    %19 = vector.load %arg3[%c0_6, %c0_7] : memref<8x1xf32, #tpu.memory_space<vmem>>, vector<8x1xf32>
    tpu.vector_store %arg3[%c0_6, %c0_7], %18 {strides = array<i32>} : memref<8x1xf32, #tpu.memory_space<vmem>>, vector<8x1xf32>,
    return
  }
  func.func @transform_0(%arg0: i32) -> (i32, i32) {
    %c0_i32 = arith.constant 0 : i32
    %c0_i32_0 = arith.constant 0 : i32
    return %arg0, %c0_i32 : i32, i32
  }
  func.func @transform_1(%arg0: i32) -> (i32, i32) {
    %c0_i32 = arith.constant 0 : i32
    %c0_i32_0 = arith.constant 0 : i32
    return %arg0, %c0_i32 : i32, i32
  }
  func.func @transform_2(%arg0: i32) -> (i32, i32) {
    %c0_i32 = arith.constant 0 : i32
    %c0_i32_0 = arith.constant 0 : i32
    return %arg0, %c0_i32 : i32, i32
  }
}

</mosaic_0001>

<bundles_post_ra>
// kernel: tpu_custom_call.1
= control target key start
LH: loop header
LB: loop body
LE: loop exit
PB: predicated region body
PF: predicated region fallthrough
CT: control target
= control target key end

     0   :  { %vm19_vm0 = vcmask 261120   ;;  %v49_v1 = vmov 0   ;;  %v13_v7 = vlaneseq  ;;  %vm37_vm2 = vcmask 7168   ;;  %s77_s0 = inlined_call_operand.vmem [shape: f32[8,32], index: 0, kind: input, shape index: {}]   ;;  %s78_s1 = inlined_call_operand.vmem [shape: s32[8,1], index: 1, kind: input, shape index: {}]   ;;  %s79_s2 = inlined_call_operand.vmem [shape: f32[8,1], index: 2, kind: output, shape index: {}]  }
   0x1   :  { %v11_v0 = vld [vmem:[%s77_s0] sm:$0xff]  ;;  %44 = vset.pattern.permute.xlu0 %v49_v1 }
   0x2   :  { %v20_v2 = vsel %vm19_vm0, %v11_v0, -inf  ;;  %v12_v3 = vld [vmem:[%s78_s1] sm:$0xff]  ;;  %v14_v8 = vand.u32 127, %v13_v7 }
   0x3   :  { %21 = vmax.xlane.f32.xlu0 %v20_v2 }
  0x19   :  { %16 = vperm.xlu0 %44, %v12_v3  }
  0x90   :  { %v22_v4 = vpop.xlane.xlu0 %21 }
  0x91   :  { %v27_v5 = vsub.f32 %v11_v0, %v22_v4 }
  0x93   :  { %v28_v6 = vmul.f32 1.442695, %v27_v5 }
  0x95   :  { %45 = vpow2.f32 %v28_v6 }
  0x98   :  { %v17_v9 = vpop.permute.xlu0 %16 }
  0x99   :  { %vm18_vm1 = vcmp.eq.s32.totalorder %v14_v8, %v17_v9 }
  0x9a   :  { %v23_v11 = vsel %vm18_vm1, %v11_v0, 0.0 }
  0x9b   :  { %v24_v13 = vsel %vm19_vm0, %v23_v11, 0.0 }
  0x9f   :  { %v46_v10 = vpop.eup %45 }
  0xa0   :  { %v30_v12 = vsel %vm19_vm0, %v46_v10, 0.0 }
  0xa1   :  { %31 = vadd.xlane.f32.xlu1 %v30_v12 }
  0xa5   :  { %25 = vadd.xlane.f32.xlu1 %v24_v13 }
 0x12e   :  { %v32_v14 = vpop.xlane.xlu1 %31 }
 0x12f   :  { %47 = vlog2.f32 %v32_v14 }
 0x132   :  { %v26_v17 = vpop.xlane.xlu1 %25 }
 0x139   :  { %v48_v15 = vpop.eup %47 }
 0x13a   :  { %v34_v16 = vmul.f32 0.6931472, %v48_v15 }
 0x13c   :  { %v35_v18 = vadd.f32 %v34_v16, %v22_v4 }
 0x13e   :  { %v36_v19 = vsub.f32 %v35_v18, %v26_v17 }
 0x140   :  { %38 = vst.msk [vmem:[%s79_s2] sm:$0xff] %vm37_vm2, %v36_v19 }

</bundles_post_ra>
